<compile_context>
chip_gen: v7x
topology: tpu7x:2x2x1
jax: 0.10.0
libtpu: 0.0.40
codegen_flags: <defaults>
</compile_context>

<pallas_src>
import jax
import jax.numpy as jnp
from jax.experimental import pallas as pl
from jax.experimental.pallas import tpu as pltpu


def mlp_ieeesmall_kernel(z_ref, w_ref, b_ref, o_ref):
    # One MXU push (f32 acc) + bias add (VPU) + sigmoid (EUP), all lane-dense.
    acc = jnp.dot(z_ref[...], w_ref[...], preferred_element_type=jnp.float32)
    o_ref[...] = jax.nn.sigmoid(acc + b_ref[...]).astype(o_ref.dtype)


def _round_up(x, m):
    return (x + m - 1) // m * m


@jax.jit
def mlp_ieeesmall_forward(z, w1, b1):
    """sigmoid(z @ w1 + b1)[:, :, None]  — matches mlp_ieeesmall.forward.

    z  : (B, Z) float32
    w1 : (Z, H) float32   (transpose of PyTorch nn.Linear's (H, Z) weight)
    b1 : (H,)   float32
    returns (B, H, 1) float32
    """
    B, Z = z.shape
    H = w1.shape[1]

    # Lane-dense feature dim (multiple of 128) and sublane-dense batch
    # (multiple of 8).  Batch is tiled in 512-row blocks when large; for tiny
    # B this collapses to a single block / single grid step.
    Hp = _round_up(H, 128)
    tb = min(512, _round_up(B, 8))
    Bp = _round_up(B, tb)

    z_p = jnp.pad(z, ((0, Bp - B), (0, 0)))
    w_p = jnp.pad(w1, ((0, 0), (0, Hp - H)))
    b_p = jnp.pad(b1, (0, Hp - H)).reshape(1, Hp)

    out = pl.pallas_call(
        mlp_ieeesmall_kernel,
        out_shape=jax.ShapeDtypeStruct((Bp, Hp), jnp.float32),
        grid=(Bp // tb,),
        in_specs=[
            pl.BlockSpec((tb, Z), lambda i: (i, 0)),    # batch tile
            pl.BlockSpec((Z, Hp), lambda i: (0, 0)),    # weights: VMEM-resident
            pl.BlockSpec((1, Hp), lambda i: (0, 0)),    # bias:    VMEM-resident
        ],
        out_specs=pl.BlockSpec((tb, Hp), lambda i: (i, 0)),
        compiler_params=pltpu.CompilerParams(
            dimension_semantics=("parallel",)),
    )(z_p, w_p, b_p)

    # Drop padded rows/lanes (padded lanes hold sigmoid(0)=0.5) and apply
    # torch's .unsqueeze(2): (B, H) -> (B, H, 1).
    return out[:B, :H, None]


if __name__ == "__main__":
    key = jax.random.PRNGKey(0)
    k_z, k_w1, k_b1, k_w2, k_b2 = jax.random.split(key, 5)

    B = 2
    Z_DIM = 8       # z_dim
    H = 100         # fc1 output size (fixed by the module)

    z = jax.random.normal(k_z, (B, Z_DIM), dtype=jnp.float32)
    w1 = jax.random.normal(k_w1, (Z_DIM, H), dtype=jnp.float32) * 0.1
    b1 = jax.random.normal(k_b1, (H,), dtype=jnp.float32) * 0.1
    # fc2 exists in __init__ but is unused in forward; created for shape fidelity.
    _w2 = jax.random.normal(k_w2, (H, H), dtype=jnp.float32) * 0.1
    _b2 = jax.random.normal(k_b2, (H,), dtype=jnp.float32) * 0.1

    out = mlp_ieeesmall_forward(z, w1, b1)
    out = jax.block_until_ready(out)

    # Sanity check against plain-JAX reference.
    ref = jax.nn.sigmoid(z @ w1 + b1)[:, :, None]
    assert out.shape == (B, H, 1), out.shape
    assert jnp.allclose(out, ref, atol=1e-5, rtol=1e-5), "mismatch vs reference"

    print("KERNEL_OK")
</pallas_src>

<mosaic_0001>
module attributes {stable_mosaic.version = 11 : i64} {
  func.func @mlp_ieeesmall_kernel(%arg0: i32, %arg1: memref<8x8xf32, #tpu.memory_space<vmem>>, %arg2: memref<8x128xf32, #tpu.memory_space<vmem>>, %arg3: memref<1x128xf32, #tpu.memory_space<vmem>>, %arg4: memref<8x128xf32, #tpu.memory_space<vmem>>) attributes {dimension_semantics = [#tpu.dimension_semantics<parallel>], iteration_bounds = array<i64: 1>, scalar_prefetch = 0 : i64, scratch_operands = 0 : i64, tpu.core_type = #tpu.core_type<tc>, window_params = [{transform_indices = @transform_0, window_bounds = array<i64: 8, 8>}, {pipeline_mode = #tpu.pipeline_mode<synchronous>, transform_indices = @transform_1, window_bounds = array<i64: 8, 128>}, {pipeline_mode = #tpu.pipeline_mode<synchronous>, transform_indices = @transform_2, window_bounds = array<i64: 1, 128>}, {transform_indices = @transform_3, window_bounds = array<i64: 8, 128>}]} {
    %c0 = arith.constant 0 : index
    %c0_0 = arith.constant 0 : index
    %0 = vector.load %arg1[%c0, %c0_0] : memref<8x8xf32, #tpu.memory_space<vmem>>, vector<8x8xf32>
    %c0_1 = arith.constant 0 : index
    %c0_2 = arith.constant 0 : index
    %1 = vector.load %arg2[%c0_1, %c0_2] : memref<8x128xf32, #tpu.memory_space<vmem>>, vector<8x128xf32>
    %cst = arith.constant dense<0.000000e+00> : vector<8x128xf32>
    %2 = tpu.matmul %0, %1, %cst {dimension_numbers = #tpu.dot_dimension_numbers<[1], [0], [0], [1], [0, 0, 1, 1], [], []>} : vector<8x8xf32>, vector<8x128xf32>, vector<8x128xf32> -> vector<8x128xf32>
    %c0_3 = arith.constant 0 : index
    %c0_4 = arith.constant 0 : index
    %3 = vector.load %arg3[%c0_3, %c0_4] : memref<1x128xf32, #tpu.memory_space<vmem>>, vector<1x128xf32>
    %4 = vector.broadcast %3 : vector<1x128xf32> to vector<8x128xf32>
    %5 = arith.addf %2, %4 : vector<8x128xf32>
    %6 = arith.negf %5 : vector<8x128xf32>
    %7 = math.exp %6 : vector<8x128xf32>
    %cst_5 = arith.constant 1.000000e+00 : f32
    %8 = vector.broadcast %cst_5 : f32 to vector<8x128xf32>
    %9 = arith.addf %8, %7 : vector<8x128xf32>
    %10 = arith.divf %8, %9 : vector<8x128xf32>
    %c0_6 = arith.constant 0 : index
    %c0_7 = arith.constant 0 : index
    %11 = vector.load %arg4[%c0_6, %c0_7] : memref<8x128xf32, #tpu.memory_space<vmem>>, vector<8x128xf32>
    tpu.vector_store %arg4[%c0_6, %c0_7], %10 {strides = array<i32>} : memref<8x128xf32, #tpu.memory_space<vmem>>, vector<8x128xf32>,
    return
  }
  func.func @transform_0(%arg0: i32) -> (i32, i32) {
    %c0_i32 = arith.constant 0 : i32
    %c0_i32_0 = arith.constant 0 : i32
    return %arg0, %c0_i32 : i32, i32
  }
  func.func @transform_1(%arg0: i32) -> (i32, i32) {
    %c0_i32 = arith.constant 0 : i32
    %c0_i32_0 = arith.constant 0 : i32
    %c0_i32_1 = arith.constant 0 : i32
    return %c0_i32, %c0_i32_0 : i32, i32
  }
  func.func @transform_2(%arg0: i32) -> (i32, i32) {
    %c0_i32 = arith.constant 0 : i32
    %c0_i32_0 = arith.constant 0 : i32
    %c0_i32_1 = arith.constant 0 : i32
    return %c0_i32, %c0_i32_0 : i32, i32
  }
  func.func @transform_3(%arg0: i32) -> (i32, i32) {
    %c0_i32 = arith.constant 0 : i32
    %c0_i32_0 = arith.constant 0 : i32
    return %arg0, %c0_i32 : i32, i32
  }
}

</mosaic_0001>

<bundles_post_ra>
// kernel: mlp_ieeesmall_forward.1
= control target key start
LH: loop header
LB: loop body
LE: loop exit
PB: predicated region body
PF: predicated region fallthrough
CT: control target
= control target key end

     0   :  { %vm23_vm0 = vcmask 64512   ;;  %v124_v0 = vmov 0.0   ;;  %vm125_vm1 = vmmov 0   ;;  %s158_s1 = inlined_call_operand.vmem [shape: f32[8,128], index: 1, kind: input, shape index: {}]   ;;  %s159_s0 = inlined_call_operand.vmem [shape: f32[8,8], index: 0, kind: input, shape index: {}]   ;;  %s160_s2 = inlined_call_operand.vmem [shape: f32[1,128], index: 2, kind: input, shape index: {}]   ;;  %s161_s3 = inlined_call_operand.vmem [shape: f32[8,128], index: 3, kind: output, shape index: {}]  }
   0x1   :  { %113 = vmatprep.subr.mxu0 %v124_v0  ;;  %v15_v1 = vld [vmem:[%s158_s1] sm:$0xff]  ;;  %115 = vmatprep.mubr.msk.f32.mxu0 %vm125_vm1, %v124_v0 }
   0x2   :  { %v14_v2 = vld [vmem:[%s159_s0] sm:$0xff]  ;;  %114 = vmatpush3.msra.mxu0 %v15_v1 }
   0x3   :  { %116 = vmatmul.mubr.msk.f32.vlgmr.msra.gmra.mrb[0].mxu0 %vm23_vm0, %v14_v2  ;;  %v108_v3 = vld [vmem:[%s160_s2] ss:$0 sm:$0xff] }
  0xd6   :  { %v93_v4 = vpop.f32.mrb[0].mxu0 }
  0xd7   :  { %v94_v5 = vadd.f32 %v108_v3, %v93_v4  ;;  %v117_v6 = vpop.f32.mrb[1].mxu0 }
  0xd9   :  { %v110_v7 = vmul.f32 -1.442695, %v94_v5 }
  0xdb   :  { %120 = vpow2.f32 %v110_v7 }
  0xe5   :  { %v121_v8 = vpop.eup %120 }
  0xe6   :  { %v100_v9 = vadd.f32 1.0, %v121_v8 }
  0xe8   :  { %122 = vrcp.f32 %v100_v9 }
  0xf2   :  { %v123_v10 = vpop.eup %122 }
  0xf3   :  { %103 = vst [vmem:[%s161_s3] sm:$0xff] %v123_v10 }

</bundles_post_ra>
